<compile_context>
chip_gen: v5e
topology: v5e:2x2
jax: 0.10.0
libtpu: 0.0.40
codegen_flags: <defaults>
</compile_context>

<pallas_src>
import functools

import jax
import jax.numpy as jnp
from jax import lax
from jax.experimental import pallas as pl
from jax.experimental.pallas import tpu as pltpu


def _cdiv(a, b):
    return -(-a // b)


def _round_up(a, b):
    return _cdiv(a, b) * b


_CHUNK = 32  # rows per in-kernel sub-chunk (multiple of 8; 32 = int8 sublane tile)


def _loss_kernel(x_ref, t_ref, o_ref, *, n, kpc, int_targets):
    c = pl.program_id(0)   # core-split axis       ("parallel")
    k = pl.program_id(1)   # row-tile reduction    ("arbitrary")

    # Zero the per-core accumulator block at the start of each core's sweep.
    @pl.when(k == 0)
    def _():
        o_ref[...] = jnp.zeros_like(o_ref)

    tr = x_ref.shape[0]
    nchunks = tr // _CHUNK

    b = c * kpc + k                 # logical (unclamped) block index
    base = b * (tr * 128)           # flat element offset of this tile
    tile_full = (base + tr * 128) <= n

    zero = jnp.zeros((8, 128), jnp.float32)

    def fold(v):
        # (_CHUNK,128) -> (8,128): pure elementwise vreg adds (no XLU).
        return v.reshape(_CHUNK // 8, 8, 128).sum(axis=0)

    def chunk_sums(i, masked):
        r0 = pl.multiple_of(i * _CHUNK, _CHUNK)
        xs = x_ref[pl.ds(r0, _CHUNK), :]            # f32 (_CHUNK,128)
        ts = t_ref[pl.ds(r0, _CHUNK), :]            # f32 or int8

        is_pos = ts == 1
        is_neg = ts == 0
        if masked:
            # Validity mask (only generated for the partial/overhang tiles).
            row = lax.broadcasted_iota(jnp.int32, (_CHUNK, 128), 0)
            col = lax.broadcasted_iota(jnp.int32, (_CHUNK, 128), 1)
            idx = base + (i * _CHUNK + row) * 128 + col
            valid = idx < n
            is_pos = jnp.logical_and(is_pos, valid)
            is_neg = jnp.logical_and(is_neg, valid)

        # Single transcendental per element: pick the log argument, then log.
        # Invalid / neither-0-nor-1 lanes get log(1) = 0, so OOB garbage
        # (possibly NaN/Inf) never propagates.  No clamping is applied: like
        # the PyTorch reference, log(x<=0) / log(1-x<=0) yields -inf/nan.
        log_arg = jnp.where(is_pos, xs, jnp.where(is_neg, 1.0 - xs, 1.0))
        lg = jnp.log(log_arg)
        v_p = jnp.where(is_pos, lg, 0.0)
        v_n = jnp.where(is_neg, lg, 0.0)

        if int_targets:
            # Binary 0/1 targets (the loss assumes this): count positives
            # directly, skipping the int8 -> f32 widening.
            v_t = jnp.where(is_pos, 1.0, 0.0)
        else:
            v_t = ts                                # exact sum(target)
            if masked:
                v_t = jnp.where(valid, v_t, 0.0)
        return fold(v_t), fold(v_p), fold(v_n)

    def accumulate(masked):
        def body(i, carry):
            at, ap, an = carry
            st, sp, sn = chunk_sums(i, masked)
            return at + st, ap + sp, an + sn

        at, ap, an = lax.fori_loop(0, nchunks, body, (zero, zero, zero),
                                   unroll=min(4, nchunks))
        o_ref[0, 0] += at
        o_ref[0, 1] += ap
        o_ref[0, 2] += an

    @pl.when(tile_full)
    def _():
        accumulate(masked=False)

    @pl.when(jnp.logical_not(tile_full))
    def _():
        accumulate(masked=True)


def _default_num_cores():
    """2 only where one Pallas device spans 2 TensorCores (v4/v5p, v7x)."""
    try:
        kind = jax.devices()[0].device_kind.lower()
    except Exception:
        return 1
    if any(tag in kind for tag in ("v4", "v5p", "v7", "7x")):
        return 2
    return 1


@functools.partial(jax.jit, static_argnames=("tile_rows", "num_cores"))
def my_loss(inp, target, *, tile_rows=1024, num_cores=None):
    """Weighted BCE-style loss matching MyLoss.forward. Returns a scalar."""
    if num_cores is None:
        num_cores = _default_num_cores()

    x = inp.reshape(-1).astype(jnp.float32)   # no-op when already f32
    n = x.shape[0]

    if jnp.issubdtype(target.dtype, jnp.floating):
        t = target.reshape(-1).astype(jnp.float32)
        int_targets = False
    else:
        # int/bool targets stream as int8 (4x less target HBM traffic).
        t = target.reshape(-1).astype(jnp.int8)
        int_targets = True

    # Lane-aligned (rows, 128) view.  Padding (a copy) happens ONLY when N is
    # not a multiple of 128 or the array is smaller than one 32-row tile; the
    # common large, 128-aligned case streams the original buffers unchanged.
    rows = max(_cdiv(n, 128), 32)
    total = rows * 128
    if total != n:
        x = jnp.pad(x, (0, total - n))
        t = jnp.pad(t, (0, total - n))
    x = x.reshape(rows, 128)
    t = t.reshape(rows, 128)

    # Tile sizing: rows per tile is a multiple of 32 (int8 sublane packing and
    # the in-kernel (8,128) fold) and never larger than the array, so only the
    # last block can overrun (handled by the in-kernel validity mask).
    tr = min(_round_up(tile_rows, 32),
             _round_up(_cdiv(rows, num_cores), 32),
             (rows // 32) * 32)
    total_blocks = _cdiv(rows, tr)
    num_cores = max(1, min(num_cores, total_blocks))
    kpc = _cdiv(total_blocks, num_cores)
    last_block = total_blocks - 1

    kernel = functools.partial(_loss_kernel, n=n, kpc=kpc, int_targets=int_targets)

    def in_index(c, k):
        # Clamp: the (at most num_cores-1) overhang blocks of the last core
        # re-read the last real block (DMA typically reused); their
        # contributions are zero because the *logical* index c*kpc+k puts the
        # whole tile past N for the in-kernel validity mask.
        return (jnp.minimum(c * kpc + k, last_block), 0)

    bytes_accessed = (x.size * x.dtype.itemsize + t.size * t.dtype.itemsize
                      + num_cores * 3 * 8 * 128 * 4)
    cost = pl.CostEstimate(flops=12 * n, transcendentals=n,
                           bytes_accessed=bytes_accessed)

    # Note: leading "parallel" axis shards across TensorCores on megacore
    # chips.  TODO(synk): on v7x, confirm in the trace that "parallel" splits
    # the grid across both TCs; switch to pltpu.CORE_PARALLEL if it does not.
    partials = pl.pallas_call(
        kernel,
        out_shape=jax.ShapeDtypeStruct((num_cores, 3, 8, 128), jnp.float32),
        grid=(num_cores, kpc),
        in_specs=[
            pl.BlockSpec((tr, 128), in_index),
            pl.BlockSpec((tr, 128), in_index),
        ],
        out_specs=pl.BlockSpec((1, 3, 8, 128), lambda c, k: (c, 0, 0, 0)),
        compiler_params=pltpu.CompilerParams(
            dimension_semantics=("parallel", "arbitrary")
        ),
        cost_estimate=cost,
    )(x, t)

    # Tiny finalize: combine per-core (8,128) partials, apply the weights.
    sums = jnp.sum(partials, axis=(0, 2, 3))   # [sum_t, sum_pos, sum_neg]
    s, sum_pos, sum_neg = sums[0], sums[1], sums[2]
    nf = float(n)
    length = nf + 1.0
    wp = length / (s + 1.0)
    wn = length / (length - s)
    return (-(wp + 1.0) * sum_pos - (wn + 1.0) * sum_neg) / nf


def my_loss_ref(inp, target):
    """Pure-JAX reference mirroring the PyTorch loop semantics."""
    x = inp.reshape(-1).astype(jnp.float32)
    t = target.reshape(-1).astype(jnp.float32)
    n = x.shape[0]
    length = n + 1.0
    s = jnp.sum(t)
    wp = length / (s + 1.0)
    wn = length / (length - s)
    loss1 = jnp.sum(jnp.where(t == 1.0, -(wp + 1.0) * jnp.log(x), 0.0))
    loss0 = jnp.sum(jnp.where(t == 0.0, -(wn + 1.0) * jnp.log(1.0 - x), 0.0))
    return (loss1 + loss0) / n


if __name__ == "__main__":
    key = jax.random.PRNGKey(0)
    ks = jax.random.split(key, 6)

    def check(name, inp, tgt, **kw):
        got = jax.block_until_ready(my_loss(inp, tgt, **kw))
        want = jax.block_until_ready(my_loss_ref(inp, tgt))
        assert jnp.isfinite(got), f"{name}: non-finite loss"
        assert jnp.allclose(got, want, rtol=1e-4, atol=1e-5), (name, got, want)

    # Case 1: module-sized input, float targets (N=2048 -> single masked tile).
    shape1 = (2, 4, 16, 16)
    inp1 = jax.random.uniform(ks[0], shape1, jnp.float32, minval=1e-3, maxval=1 - 1e-3)
    tgt1 = jax.random.bernoulli(ks[1], 0.3, shape1).astype(jnp.float32)
    check("case1", inp1, tgt1)

    # Case 2: N=32768, 128-aligned -> zero-copy streaming, fully-valid tiles.
    shape2 = (2, 4, 64, 64)
    inp2 = jax.random.uniform(ks[2], shape2, jnp.float32, minval=1e-3, maxval=1 - 1e-3)
    tgt2_bool = jax.random.bernoulli(ks[3], 0.3, shape2)
    check("case2", inp2, tgt2_bool.astype(jnp.float32))

    # Case 3: int8 target stream (binary targets), fully-valid tiles.
    check("case3", inp2, tgt2_bool.astype(jnp.int8))

    # Cases 4/5: rows (240) not a multiple of the tile -> multi-step
    # accumulation along the reduction axis plus a partial (masked) last tile.
    shape3 = (2, 4, 60, 64)   # N = 30720
    inp3 = jax.random.uniform(ks[4], shape3, jnp.float32, minval=1e-3, maxval=1 - 1e-3)
    tgt3_bool = jax.random.bernoulli(ks[5], 0.3, shape3)
    check("case4", inp3, tgt3_bool.astype(jnp.float32), tile_rows=64)
    check("case5", inp3, tgt3_bool.astype(jnp.int8), tile_rows=64)

    print("KERNEL_OK")
</pallas_src>

<mosaic_0001>
module attributes {stable_mosaic.version = 11 : i64} {
  func.func @_loss_kernel(%arg0: i32, %arg1: i32, %arg2: memref<32x128xf32, #tpu.memory_space<vmem>>, %arg3: memref<32x128xf32, #tpu.memory_space<vmem>>, %arg4: memref<1x3x8x128xf32, #tpu.memory_space<vmem>>) attributes {dimension_semantics = [#tpu.dimension_semantics<parallel>, #tpu.dimension_semantics<arbitrary>], iteration_bounds = array<i64: 1, 1>, scalar_prefetch = 0 : i64, scratch_operands = 0 : i64, tpu.core_type = #tpu.core_type<tc>, window_params = [{transform_indices = @transform_0, window_bounds = array<i64: 32, 128>}, {transform_indices = @transform_1, window_bounds = array<i64: 32, 128>}, {transform_indices = @transform_2, window_bounds = array<i64: 1, 3, 8, 128>}]} {
    %c0_i32 = arith.constant 0 : i32
    %0 = arith.cmpi eq, %arg1, %c0_i32 : i32
    %1 = arith.extui %0 : i1 to i32
    %c0_i32_0 = arith.constant 0 : i32
    %2 = arith.cmpi ne, %1, %c0_i32_0 : i32
    scf.if %2 {
      %cst_4 = arith.constant 0.000000e+00 : f32
      %14 = vector.broadcast %cst_4 : f32 to vector<1x3x8x128xf32>
      %c0 = arith.constant 0 : index
      %c0_5 = arith.constant 0 : index
      %c0_6 = arith.constant 0 : index
      %c0_7 = arith.constant 0 : index
      %15 = vector.load %arg4[%c0, %c0_5, %c0_6, %c0_7] : memref<1x3x8x128xf32, #tpu.memory_space<vmem>>, vector<1x3x8x128xf32>
      tpu.vector_store %arg4[%c0, %c0_5, %c0_6, %c0_7], %14 {strides = array<i32>} : memref<1x3x8x128xf32, #tpu.memory_space<vmem>>, vector<1x3x8x128xf32>,
    } else {
    }
    %c1_i32 = arith.constant 1 : i32
    %3 = arith.muli %arg0, %c1_i32 : i32
    %4 = arith.addi %3, %arg1 : i32
    %c4096_i32 = arith.constant 4096 : i32
    %5 = arith.muli %4, %c4096_i32 : i32
    %c4096_i32_1 = arith.constant 4096 : i32
    %6 = arith.addi %5, %c4096_i32_1 : i32
    %c2048_i32 = arith.constant 2048 : i32
    %7 = arith.cmpi sle, %6, %c2048_i32 : i32
    %cst = arith.constant 0.000000e+00 : f32
    %8 = vector.broadcast %cst : f32 to vector<8x128xf32>
    %9 = arith.extui %7 : i1 to i32
    %c0_i32_2 = arith.constant 0 : i32
    %10 = arith.cmpi ne, %9, %c0_i32_2 : i32
    scf.if %10 {
      %c0_i32_4 = arith.constant 0 : i32
      %c32_i32 = arith.constant 32 : i32
      %14 = arith.muli %c0_i32_4, %c32_i32 : i32
      %15 = tpu.assume_multiple %14, 32 : i32
      %16 = arith.index_cast %15 : i32 to index
      %c0 = arith.constant 0 : index
      %17 = vector.load %arg2[%16, %c0] : memref<32x128xf32, #tpu.memory_space<vmem>>, vector<32x128xf32>
      %18 = arith.index_cast %15 : i32 to index
      %c0_5 = arith.constant 0 : index
      %19 = vector.load %arg3[%18, %c0_5] : memref<32x128xf32, #tpu.memory_space<vmem>>, vector<32x128xf32>
      %cst_6 = arith.constant 1.000000e+00 : f32
      %20 = vector.broadcast %cst_6 : f32 to vector<32x128xf32>
      %21 = arith.cmpf oeq, %19, %20 : vector<32x128xf32>
      %cst_7 = arith.constant 0.000000e+00 : f32
      %22 = vector.broadcast %cst_7 : f32 to vector<32x128xf32>
      %23 = arith.cmpf oeq, %19, %22 : vector<32x128xf32>
      %cst_8 = arith.constant 1.000000e+00 : f32
      %24 = vector.broadcast %cst_8 : f32 to vector<32x128xf32>
      %25 = arith.subf %24, %17 : vector<32x128xf32>
      %cst_9 = arith.constant 1.000000e+00 : f32
      %26 = vector.broadcast %cst_9 : f32 to vector<32x128xf32>
      %27 = arith.select %23, %25, %26 : vector<32x128xi1>, vector<32x128xf32>
      %28 = arith.select %21, %17, %27 : vector<32x128xi1>, vector<32x128xf32>
      %29 = math.log %28 : vector<32x128xf32>
      %cst_10 = arith.constant 0.000000e+00 : f32
      %30 = vector.broadcast %cst_10 : f32 to vector<32x128xf32>
      %31 = arith.select %21, %29, %30 : vector<32x128xi1>, vector<32x128xf32>
      %cst_11 = arith.constant 0.000000e+00 : f32
      %32 = vector.broadcast %cst_11 : f32 to vector<32x128xf32>
      %33 = arith.select %23, %29, %32 : vector<32x128xi1>, vector<32x128xf32>
      %34 = vector.shape_cast %19 : vector<32x128xf32> to vector<4x8x128xf32>
      %cst_12 = arith.constant dense<0.000000e+00> : vector<8x128xf32>
      %35 = vector.multi_reduction <add>, %34, %cst_12 [0] : vector<4x8x128xf32> to vector<8x128xf32>
      %36 = vector.shape_cast %31 : vector<32x128xf32> to vector<4x8x128xf32>
      %cst_13 = arith.constant dense<0.000000e+00> : vector<8x128xf32>
      %37 = vector.multi_reduction <add>, %36, %cst_13 [0] : vector<4x8x128xf32> to vector<8x128xf32>
      %38 = vector.shape_cast %33 : vector<32x128xf32> to vector<4x8x128xf32>
      %cst_14 = arith.constant dense<0.000000e+00> : vector<8x128xf32>
      %39 = vector.multi_reduction <add>, %38, %cst_14 [0] : vector<4x8x128xf32> to vector<8x128xf32>
      %40 = arith.addf %8, %35 : vector<8x128xf32>
      %41 = arith.addf %8, %37 : vector<8x128xf32>
      %42 = arith.addf %8, %39 : vector<8x128xf32>
      %c1_i32_15 = arith.constant 1 : i32
      %c0_16 = arith.constant 0 : index
      %c0_17 = arith.constant 0 : index
      %c0_18 = arith.constant 0 : index
      %c0_19 = arith.constant 0 : index
      %43 = vector.load %arg4[%c0_16, %c0_17, %c0_18, %c0_19] : memref<1x3x8x128xf32, #tpu.memory_space<vmem>>, vector<1x1x8x128xf32>
      %44 = vector.shape_cast %43 : vector<1x1x8x128xf32> to vector<8x128xf32>
      %45 = arith.addf %44, %40 : vector<8x128xf32>
      %c0_20 = arith.constant 0 : index
      %c0_21 = arith.constant 0 : index
      %c0_22 = arith.constant 0 : index
      %c0_23 = arith.constant 0 : index
      %46 = vector.load %arg4[%c0_20, %c0_21, %c0_22, %c0_23] : memref<1x3x8x128xf32, #tpu.memory_space<vmem>>, vector<1x1x8x128xf32>
      %47 = vector.shape_cast %46 : vector<1x1x8x128xf32> to vector<8x128xf32>
      %48 = vector.shape_cast %45 : vector<8x128xf32> to vector<1x1x8x128xf32>
      tpu.vector_store %arg4[%c0_20, %c0_21, %c0_22, %c0_23], %48 {strides = array<i32>} : memref<1x3x8x128xf32, #tpu.memory_space<vmem>>, vector<1x1x8x128xf32>,
      %c0_24 = arith.constant 0 : index
      %c1 = arith.constant 1 : index
      %c0_25 = arith.constant 0 : index
      %c0_26 = arith.constant 0 : index
      %49 = vector.load %arg4[%c0_24, %c1, %c0_25, %c0_26] : memref<1x3x8x128xf32, #tpu.memory_space<vmem>>, vector<1x1x8x128xf32>
      %50 = vector.shape_cast %49 : vector<1x1x8x128xf32> to vector<8x128xf32>
      %51 = arith.addf %50, %41 : vector<8x128xf32>
      %c0_27 = arith.constant 0 : index
      %c1_28 = arith.constant 1 : index
      %c0_29 = arith.constant 0 : index
      %c0_30 = arith.constant 0 : index
      %52 = vector.load %arg4[%c0_27, %c1_28, %c0_29, %c0_30] : memref<1x3x8x128xf32, #tpu.memory_space<vmem>>, vector<1x1x8x128xf32>
      %53 = vector.shape_cast %52 : vector<1x1x8x128xf32> to vector<8x128xf32>
      %54 = vector.shape_cast %51 : vector<8x128xf32> to vector<1x1x8x128xf32>
      tpu.vector_store %arg4[%c0_27, %c1_28, %c0_29, %c0_30], %54 {strides = array<i32>} : memref<1x3x8x128xf32, #tpu.memory_space<vmem>>, vector<1x1x8x128xf32>,
      %c0_31 = arith.constant 0 : index
      %c2 = arith.constant 2 : index
      %c0_32 = arith.constant 0 : index
      %c0_33 = arith.constant 0 : index
      %55 = vector.load %arg4[%c0_31, %c2, %c0_32, %c0_33] : memref<1x3x8x128xf32, #tpu.memory_space<vmem>>, vector<1x1x8x128xf32>
      %56 = vector.shape_cast %55 : vector<1x1x8x128xf32> to vector<8x128xf32>
      %57 = arith.addf %56, %42 : vector<8x128xf32>
      %c0_34 = arith.constant 0 : index
      %c2_35 = arith.constant 2 : index
      %c0_36 = arith.constant 0 : index
      %c0_37 = arith.constant 0 : index
      %58 = vector.load %arg4[%c0_34, %c2_35, %c0_36, %c0_37] : memref<1x3x8x128xf32, #tpu.memory_space<vmem>>, vector<1x1x8x128xf32>
      %59 = vector.shape_cast %58 : vector<1x1x8x128xf32> to vector<8x128xf32>
      %60 = vector.shape_cast %57 : vector<8x128xf32> to vector<1x1x8x128xf32>
      tpu.vector_store %arg4[%c0_34, %c2_35, %c0_36, %c0_37], %60 {strides = array<i32>} : memref<1x3x8x128xf32, #tpu.memory_space<vmem>>, vector<1x1x8x128xf32>,
    } else {
    }
    %true = arith.constant true
    %11 = arith.xori %7, %true : i1
    %12 = arith.extui %11 : i1 to i32
    %c0_i32_3 = arith.constant 0 : i32
    %13 = arith.cmpi ne, %12, %c0_i32_3 : i32
    scf.if %13 {
      %c0_i32_4 = arith.constant 0 : i32
      %c32_i32 = arith.constant 32 : i32
      %14 = arith.muli %c0_i32_4, %c32_i32 : i32
      %15 = tpu.assume_multiple %14, 32 : i32
      %16 = arith.index_cast %15 : i32 to index
      %c0 = arith.constant 0 : index
      %17 = vector.load %arg2[%16, %c0] : memref<32x128xf32, #tpu.memory_space<vmem>>, vector<32x128xf32>
      %18 = arith.index_cast %15 : i32 to index
      %c0_5 = arith.constant 0 : index
      %19 = vector.load %arg3[%18, %c0_5] : memref<32x128xf32, #tpu.memory_space<vmem>>, vector<32x128xf32>
      %cst_6 = arith.constant 1.000000e+00 : f32
      %20 = vector.broadcast %cst_6 : f32 to vector<32x128xf32>
      %21 = arith.cmpf oeq, %19, %20 : vector<32x128xf32>
      %cst_7 = arith.constant 0.000000e+00 : f32
      %22 = vector.broadcast %cst_7 : f32 to vector<32x128xf32>
      %23 = arith.cmpf oeq, %19, %22 : vector<32x128xf32>
      %24 = tpu.iota {dimensions = array<i32: 0>} : vector<32x128xi32>
      %25 = tpu.iota {dimensions = array<i32: 1>} : vector<32x128xi32>
      %c32_i32_8 = arith.constant 32 : i32
      %26 = arith.muli %c0_i32_4, %c32_i32_8 : i32
      %27 = vector.broadcast %26 : i32 to vector<32x128xi32>
      %28 = arith.addi %27, %24 : vector<32x128xi32>
      %c128_i32 = arith.constant 128 : i32
      %29 = vector.broadcast %c128_i32 : i32 to vector<32x128xi32>
      %30 = arith.muli %28, %29 : vector<32x128xi32>
      %31 = vector.broadcast %5 : i32 to vector<32x128xi32>
      %32 = arith.addi %31, %30 : vector<32x128xi32>
      %33 = arith.addi %32, %25 : vector<32x128xi32>
      %c2048_i32_9 = arith.constant 2048 : i32
      %34 = vector.broadcast %c2048_i32_9 : i32 to vector<32x128xi32>
      %35 = arith.cmpi slt, %33, %34 : vector<32x128xi32>
      %36 = arith.andi %21, %35 : vector<32x128xi1>
      %37 = arith.andi %23, %35 : vector<32x128xi1>
      %cst_10 = arith.constant 1.000000e+00 : f32
      %38 = vector.broadcast %cst_10 : f32 to vector<32x128xf32>
      %39 = arith.subf %38, %17 : vector<32x128xf32>
      %cst_11 = arith.constant 1.000000e+00 : f32
      %40 = vector.broadcast %cst_11 : f32 to vector<32x128xf32>
      %41 = arith.select %37, %39, %40 : vector<32x128xi1>, vector<32x128xf32>
      %42 = arith.select %36, %17, %41 : vector<32x128xi1>, vector<32x128xf32>
      %43 = math.log %42 : vector<32x128xf32>
      %cst_12 = arith.constant 0.000000e+00 : f32
      %44 = vector.broadcast %cst_12 : f32 to vector<32x128xf32>
      %45 = arith.select %36, %43, %44 : vector<32x128xi1>, vector<32x128xf32>
      %cst_13 = arith.constant 0.000000e+00 : f32
      %46 = vector.broadcast %cst_13 : f32 to vector<32x128xf32>
      %47 = arith.select %37, %43, %46 : vector<32x128xi1>, vector<32x128xf32>
      %cst_14 = arith.constant 0.000000e+00 : f32
      %48 = vector.broadcast %cst_14 : f32 to vector<32x128xf32>
      %49 = arith.select %35, %19, %48 : vector<32x128xi1>, vector<32x128xf32>
      %50 = vector.shape_cast %49 : vector<32x128xf32> to vector<4x8x128xf32>
      %cst_15 = arith.constant dense<0.000000e+00> : vector<8x128xf32>
      %51 = vector.multi_reduction <add>, %50, %cst_15 [0] : vector<4x8x128xf32> to vector<8x128xf32>
      %52 = vector.shape_cast %45 : vector<32x128xf32> to vector<4x8x128xf32>
      %cst_16 = arith.constant dense<0.000000e+00> : vector<8x128xf32>
      %53 = vector.multi_reduction <add>, %52, %cst_16 [0] : vector<4x8x128xf32> to vector<8x128xf32>
      %54 = vector.shape_cast %47 : vector<32x128xf32> to vector<4x8x128xf32>
      %cst_17 = arith.constant dense<0.000000e+00> : vector<8x128xf32>
      %55 = vector.multi_reduction <add>, %54, %cst_17 [0] : vector<4x8x128xf32> to vector<8x128xf32>
      %56 = arith.addf %8, %51 : vector<8x128xf32>
      %57 = arith.addf %8, %53 : vector<8x128xf32>
      %58 = arith.addf %8, %55 : vector<8x128xf32>
      %c1_i32_18 = arith.constant 1 : i32
      %c0_19 = arith.constant 0 : index
      %c0_20 = arith.constant 0 : index
      %c0_21 = arith.constant 0 : index
      %c0_22 = arith.constant 0 : index
      %59 = vector.load %arg4[%c0_19, %c0_20, %c0_21, %c0_22] : memref<1x3x8x128xf32, #tpu.memory_space<vmem>>, vector<1x1x8x128xf32>
      %60 = vector.shape_cast %59 : vector<1x1x8x128xf32> to vector<8x128xf32>
      %61 = arith.addf %60, %56 : vector<8x128xf32>
      %c0_23 = arith.constant 0 : index
      %c0_24 = arith.constant 0 : index
      %c0_25 = arith.constant 0 : index
      %c0_26 = arith.constant 0 : index
      %62 = vector.load %arg4[%c0_23, %c0_24, %c0_25, %c0_26] : memref<1x3x8x128xf32, #tpu.memory_space<vmem>>, vector<1x1x8x128xf32>
      %63 = vector.shape_cast %62 : vector<1x1x8x128xf32> to vector<8x128xf32>
      %64 = vector.shape_cast %61 : vector<8x128xf32> to vector<1x1x8x128xf32>
      tpu.vector_store %arg4[%c0_23, %c0_24, %c0_25, %c0_26], %64 {strides = array<i32>} : memref<1x3x8x128xf32, #tpu.memory_space<vmem>>, vector<1x1x8x128xf32>,
      %c0_27 = arith.constant 0 : index
      %c1 = arith.constant 1 : index
      %c0_28 = arith.constant 0 : index
      %c0_29 = arith.constant 0 : index
      %65 = vector.load %arg4[%c0_27, %c1, %c0_28, %c0_29] : memref<1x3x8x128xf32, #tpu.memory_space<vmem>>, vector<1x1x8x128xf32>
      %66 = vector.shape_cast %65 : vector<1x1x8x128xf32> to vector<8x128xf32>
      %67 = arith.addf %66, %57 : vector<8x128xf32>
      %c0_30 = arith.constant 0 : index
      %c1_31 = arith.constant 1 : index
      %c0_32 = arith.constant 0 : index
      %c0_33 = arith.constant 0 : index
      %68 = vector.load %arg4[%c0_30, %c1_31, %c0_32, %c0_33] : memref<1x3x8x128xf32, #tpu.memory_space<vmem>>, vector<1x1x8x128xf32>
      %69 = vector.shape_cast %68 : vector<1x1x8x128xf32> to vector<8x128xf32>
      %70 = vector.shape_cast %67 : vector<8x128xf32> to vector<1x1x8x128xf32>
      tpu.vector_store %arg4[%c0_30, %c1_31, %c0_32, %c0_33], %70 {strides = array<i32>} : memref<1x3x8x128xf32, #tpu.memory_space<vmem>>, vector<1x1x8x128xf32>,
      %c0_34 = arith.constant 0 : index
      %c2 = arith.constant 2 : index
      %c0_35 = arith.constant 0 : index
      %c0_36 = arith.constant 0 : index
      %71 = vector.load %arg4[%c0_34, %c2, %c0_35, %c0_36] : memref<1x3x8x128xf32, #tpu.memory_space<vmem>>, vector<1x1x8x128xf32>
      %72 = vector.shape_cast %71 : vector<1x1x8x128xf32> to vector<8x128xf32>
      %73 = arith.addf %72, %58 : vector<8x128xf32>
      %c0_37 = arith.constant 0 : index
      %c2_38 = arith.constant 2 : index
      %c0_39 = arith.constant 0 : index
      %c0_40 = arith.constant 0 : index
      %74 = vector.load %arg4[%c0_37, %c2_38, %c0_39, %c0_40] : memref<1x3x8x128xf32, #tpu.memory_space<vmem>>, vector<1x1x8x128xf32>
      %75 = vector.shape_cast %74 : vector<1x1x8x128xf32> to vector<8x128xf32>
      %76 = vector.shape_cast %73 : vector<8x128xf32> to vector<1x1x8x128xf32>
      tpu.vector_store %arg4[%c0_37, %c2_38, %c0_39, %c0_40], %76 {strides = array<i32>} : memref<1x3x8x128xf32, #tpu.memory_space<vmem>>, vector<1x1x8x128xf32>,
    } else {
    }
    return
  }
  func.func @transform_0(%arg0: i32, %arg1: i32) -> (i32, i32) {
    %c1_i32 = arith.constant 1 : i32
    %0 = arith.muli %arg0, %c1_i32 : i32
    %1 = arith.addi %0, %arg1 : i32
    %c0_i32 = arith.constant 0 : i32
    %2 = arith.minsi %1, %c0_i32 : i32
    %c0_i32_0 = arith.constant 0 : i32
    %c0_i32_1 = arith.constant 0 : i32
    return %2, %c0_i32_0 : i32, i32
  }
  func.func @transform_1(%arg0: i32, %arg1: i32) -> (i32, i32) {
    %c1_i32 = arith.constant 1 : i32
    %0 = arith.muli %arg0, %c1_i32 : i32
    %1 = arith.addi %0, %arg1 : i32
    %c0_i32 = arith.constant 0 : i32
    %2 = arith.minsi %1, %c0_i32 : i32
    %c0_i32_0 = arith.constant 0 : i32
    %c0_i32_1 = arith.constant 0 : i32
    return %2, %c0_i32_0 : i32, i32
  }
  func.func @transform_2(%arg0: i32, %arg1: i32) -> (i32, i32, i32, i32) {
    %c0_i32 = arith.constant 0 : i32
    %c0_i32_0 = arith.constant 0 : i32
    %c0_i32_1 = arith.constant 0 : i32
    %c0_i32_2 = arith.constant 0 : i32
    return %arg0, %c0_i32, %c0_i32_0, %c0_i32_1 : i32, i32, i32, i32
  }
}

</mosaic_0001>

<bundles_post_ra>
// kernel: my_loss.1
= control target key start
LH: loop header
LB: loop body
LE: loop exit
PB: predicated region body
PF: predicated region fallthrough
CT: control target
= control target key end

     0   :  { %v176_v0 = vlaneseq  ;;  %s421_s1 = inlined_call_operand.vmem [shape: f32[32,128], index: 1, kind: input, shape index: {}]   ;;  %s422_s0 = inlined_call_operand.vmem [shape: f32[32,128], index: 0, kind: input, shape index: {}]   ;;  %s423_s2 = inlined_call_operand.vmem [shape: f32[1,3,8,128], index: 2, kind: output, shape index: {}]  }
   0x1   :  { %v164_v1 = vld [vmem:[%s421_s1] sm:$0xff]  ;;  %v165_v4 = vld [vmem:[%s421_s1 + $0x8] sm:$0xff]  ;;  %v166_v6 = vld [vmem:[%s421_s1 + $0x10] sm:$0xff] }
   0x2   :  { %v177_v2 = vshrl.u32 %v176_v0, 7  ;;  %v160_v3 = vld [vmem:[%s422_s0] sm:$0xff]  ;;  %v182_v5 = vand.u32 127, %v176_v0  ;;  %v161_v11 = vld [vmem:[%s422_s0 + $0x8] sm:$0xff]  ;;  %vm172_vm0 = vcmp.eq.f32.partialorder %v164_v1, 0.0  ;;  %v167_v13 = vld [vmem:[%s421_s1 + $0x18] sm:$0xff] }
   0x3   :  { %v208_v12 = vsub.f32 1.0, %v160_v3  ;;  %v162_v18 = vld [vmem:[%s422_s0 + $0x10] sm:$0xff]  ;;  %v163_v19 = vld [vmem:[%s422_s0 + $0x18] sm:$0xff]  ;;  %vm173_vm1 = vcmp.eq.f32.partialorder %v165_v4, 0.0  ;;  %vm174_vm2 = vcmp.eq.f32.partialorder %v166_v6, 0.0  ;;  %vm168_vm3 = vcmp.eq.f32.partialorder %v164_v1, 1.0 }
   0x4   :  { %v178_v7 = vadd.s32 8, %v177_v2  ;;  %v179_v8 = vadd.s32 16, %v177_v2  ;;  %v180_v9 = vadd.s32 24, %v177_v2  ;;  %v183_v10 = vmul.u32 128, %v177_v2 }
   0x5   :  { %v209_v20 = vsub.f32 1.0, %v161_v11  ;;  %vm175_vm5 = vcmp.eq.f32.partialorder %v167_v13, 0.0  ;;  %v210_v26 = vsub.f32 1.0, %v162_v18  ;;  %v211_v27 = vsub.f32 1.0, %v163_v19 }
   0x6   :  { %v184_v14 = vmul.u32 128, %v178_v7  ;;  %v185_v15 = vmul.u32 128, %v179_v8  ;;  %v186_v16 = vmul.u32 128, %v180_v9  ;;  %v192_v17 = vadd.s32 %v183_v10, %v182_v5 }
   0x7   :  { %vm169_vm12 = vcmp.eq.f32.partialorder %v165_v4, 1.0  ;;  %vm170_vm14 = vcmp.eq.f32.partialorder %v166_v6, 1.0 }
   0x8   :  { %v193_v21 = vadd.s32 %v184_v14, %v182_v5  ;;  %v194_v22 = vadd.s32 %v185_v15, %v182_v5  ;;  %v195_v23 = vadd.s32 %v186_v16, %v182_v5  ;;  %vm196_vm4 = vcmp.lt.s32.totalorder %v192_v17, 2048 }
   0x9   :  { %vm336_vm6 = vmand %vm172_vm0, %vm196_vm4  ;;  %v236_v25 = vsel %vm196_vm4, %v164_v1, 0.0  ;;  %vm171_vm0 = vcmp.eq.f32.partialorder %v167_v13, 1.0 }
   0xa   :  { %vm197_vm7 = vcmp.lt.s32.totalorder %v193_v21, 2048  ;;  %vm198_vm8 = vcmp.lt.s32.totalorder %v194_v22, 2048  ;;  %vm199_vm9 = vcmp.lt.s32.totalorder %v195_v23, 2048  ;;  %vm340_vm10 = vmand %vm168_vm3, %vm196_vm4  ;;  %v212_v29 = vsel %vm336_vm6, %v208_v12, 1.0 }
   0xb   :  { %vm348_vm11 = vmand %vm173_vm1, %vm197_vm7  ;;  %v237_v31 = vsel %vm197_vm7, %v165_v4, 0.0  ;;  %v238_v32 = vsel %vm198_vm8, %v166_v6, 0.0  ;;  %v216_v33 = vsel %vm340_vm10, %v160_v3, %v212_v29  ;;  %v239_v38 = vsel %vm199_vm9, %v167_v13, 0.0 }
   0xc   :  { %vm358_vm13 = vmand %vm174_vm2, %vm198_vm8  ;;  %v240_v35 = vadd.f32 %v237_v31, %v236_v25  ;;  %v213_v36 = vsel %vm348_vm11, %v209_v20, 1.0  ;;  %288 = vlog2.f32 %v216_v33 }
   0xd   :  { %vm366_vm15 = vmand %vm175_vm5, %vm199_vm9  ;;  %v214_v39 = vsel %vm358_vm13, %v210_v26, 1.0 }
   0xe   :  { %v241_v40 = vadd.f32 %v240_v35, %v238_v32  ;;  %vm374_vm1 = vmand %vm169_vm12, %vm197_vm7  ;;  %v215_v42 = vsel %vm366_vm15, %v211_v27, 1.0 }
   0xf   :  { %vm381_vm2 = vmand %vm170_vm14, %vm198_vm8  ;;  %v217_v44 = vsel %vm374_vm1, %v161_v11, %v213_v36 }
  0x10   :  { %v242_v45 = vadd.f32 %v241_v40, %v239_v38  ;;  %vm388_vm3 = vmand %vm171_vm0, %vm199_vm9  ;;  %v218_v47 = vsel %vm381_vm2, %v162_v18, %v214_v39  ;;  %290 = vlog2.f32 %v217_v44 }
  0x11   :  { %v219_v48 = vsel %vm388_vm3, %v163_v19, %v215_v42  ;;  %292 = vlog2.f32 %v218_v47 }
  0x12   :  { %v289_v49 = vpop.eup %288  ;;  %294 = vlog2.f32 %v219_v48  ;;  %254 = vst [vmem:[%s423_s2] sm:$0xff] %v242_v45 }
  0x13   :  { %v221_v50 = vmul.f32 0.6931472, %v289_v49 }
  0x15   :  { %v228_v54 = vsel %vm340_vm10, %v221_v50, 0.0  ;;  %v232_v55 = vsel %vm336_vm6, %v221_v50, 0.0 }
  0x16   :  { %v291_v51 = vpop.eup %290 }
  0x17   :  { %v293_v52 = vpop.eup %292  ;;  %v223_v53 = vmul.f32 0.6931472, %v291_v51 }
  0x18   :  { %v295_v56 = vpop.eup %294  ;;  %v225_v57 = vmul.f32 0.6931472, %v293_v52 }
  0x19   :  { %v227_v58 = vmul.f32 0.6931472, %v295_v56  ;;  %v229_v59 = vsel %vm374_vm1, %v223_v53, 0.0  ;;  %v233_v60 = vsel %vm348_vm11, %v223_v53, 0.0 }
  0x1a   :  { %v230_v61 = vsel %vm381_vm2, %v225_v57, 0.0  ;;  %v243_v62 = vadd.f32 %v229_v59, %v228_v54  ;;  %v234_v63 = vsel %vm358_vm13, %v225_v57, 0.0  ;;  %v246_v0 = vadd.f32 %v233_v60, %v232_v55 }
  0x1b   :  { %v231_v1 = vsel %vm388_vm3, %v227_v58, 0.0  ;;  %v235_v2 = vsel %vm366_vm15, %v227_v58, 0.0 }
  0x1c   :  { %v244_v3 = vadd.f32 %v243_v62, %v230_v61  ;;  %v247_v4 = vadd.f32 %v246_v0, %v234_v63 }
  0x1e   :  { %v245_v5 = vadd.f32 %v244_v3, %v231_v1  ;;  %v248_v6 = vadd.f32 %v247_v4, %v235_v2 }
  0x20   :  { %284 = vst [vmem:[%s423_s2 + $0x8] sm:$0xff] %v245_v5 }
  0x21   :  { %286 = vst [vmem:[%s423_s2 + $0x10] sm:$0xff] %v248_v6 }

</bundles_post_ra>
